<compile_context>
chip_gen: v7x
topology: tpu7x:2x2x1
jax: 0.10.0
libtpu: 0.0.40
codegen_flags: <defaults>
</compile_context>

<pallas_src>
import jax
import jax.numpy as jnp
from jax import lax
from jax.experimental import pallas as pl
from jax.experimental.pallas import tpu as pltpu


def _regression_kernel(tok_ref, w_ref, b_ref, out_ref, acc_ref):
    kv = pl.program_id(1)                    # V-tile (reduction) index

    @pl.when(kv == 0)
    def _():
        acc_ref[...] = jnp.zeros_like(acc_ref)

    tok = tok_ref[...]                       # (TB, S) int32
    TB, S = tok.shape
    TV = w_ref.shape[1]

    # Global vocab ids covered by this V-tile, laid out on lanes: (TB, TV).
    v_ids = lax.broadcasted_iota(jnp.int32, (TB, TV), 1) + kv * TV

    # Multi-hot accumulation: OR one token column at a time.  S is small and static, so the
    # Python loop fully unrolls into straight-line VPU compares.
    # TODO(synk): for large S, chunk S via a grid axis / fori_loop to bound live ranges.
    mh = jnp.zeros((TB, TV), dtype=jnp.bool_)
    for s in range(S):
        mh = jnp.logical_or(mh, tok[:, s:s + 1] == v_ids)
    mh = mh.astype(jnp.float32)              # (TB, TV)

    # MXU contraction over this V tile: (1, TV) x (TB, TV)^T -> (1, TB)  (QK^T-style dims).
    acc_ref[...] += lax.dot_general(
        w_ref[...], mh,
        dimension_numbers=(((1,), (1,)), ((), ())),
        preferred_element_type=jnp.float32)

    @pl.when(kv == pl.num_programs(1) - 1)
    def _():
        logits = acc_ref[...] + b_ref[0]                 # scalar bias from SMEM
        out_ref[...] = 1.0 / (1.0 + jnp.exp(-logits))    # exact sigmoid (EUP exp + VPU div)


def simple_regression_model(token_ids, weight, bias, *, tile_v=512, tile_b=128):
    """token_ids: (B, S) int32; weight: (1, V) f32 (torch Linear layout); bias: (1,) f32.

    Returns label predictions of shape (B, 1), matching the PyTorch module.
    """
    B, S = token_ids.shape
    assert weight.shape[0] == 1
    V = weight.shape[1]

    tile_v = min(tile_v, V)
    tile_b = min(tile_b, B)
    if V % tile_v != 0:
        tile_v = V   # TODO(synk): mask the tail V-tile instead of disabling V tiling.
    if B % tile_b != 0:
        tile_b = B

    nb = B // tile_b
    nv = V // tile_v

    bias_s = bias.reshape(1).astype(jnp.float32)

    out_t = pl.pallas_call(
        _regression_kernel,
        out_shape=jax.ShapeDtypeStruct((1, B), jnp.float32),   # lane-dense: batch on lanes
        grid_spec=pltpu.PrefetchScalarGridSpec(
            num_scalar_prefetch=0,
            grid=(nb, nv),
            in_specs=[
                pl.BlockSpec((tile_b, S), lambda b, k: (b, 0)),      # token ids (resident per b)
                pl.BlockSpec((1, tile_v), lambda b, k: (0, k)),      # weight V-tile (pipelined)
                pl.BlockSpec(memory_space=pltpu.MemorySpace.SMEM),   # scalar bias
            ],
            out_specs=pl.BlockSpec((1, tile_b), lambda b, k: (0, b)),
            scratch_shapes=[pltpu.VMEM((1, tile_b), jnp.float32)],   # logits accumulator
        ),
        compiler_params=pltpu.CompilerParams(
            dimension_semantics=("parallel", "arbitrary"),
            vmem_limit_bytes=32 * 1024 * 1024,   # fits v5e/v6e/v7x scoped-VMEM budgets
        ),
    )(token_ids.astype(jnp.int32), weight.astype(jnp.float32), bias_s)

    return out_t.T   # (B, 1) to match the module's output shape


def _reference(token_ids, weight, bias):
    B = token_ids.shape[0]
    V = weight.shape[1]
    multihot = jnp.zeros((B, V), jnp.float32)
    multihot = multihot.at[jnp.arange(B)[:, None], token_ids].set(1.0)
    logits = multihot @ weight[0] + bias[0]
    return jax.nn.sigmoid(logits)[:, None]


if __name__ == "__main__":
    B, S, V = 4, 8, 1024   # batch, sequence length, vocab size (small demo shapes)

    key = jax.random.PRNGKey(0)
    k_tok, k_w = jax.random.split(key)

    token_ids = jax.random.randint(k_tok, (B, S), 0, V, dtype=jnp.int32)

    # Deterministic parameter init matching the module's __init__:
    # nn.Linear(V, 1): weight (1, V) xavier_uniform, bias zeroed.
    bound = (6.0 / (V + 1)) ** 0.5
    weight = jax.random.uniform(k_w, (1, V), jnp.float32, minval=-bound, maxval=bound)
    bias = jnp.zeros((1,), jnp.float32)

    # tile_v=256 -> 4 reduction steps, exercising the accumulator init/finalize path.
    out = simple_regression_model(token_ids, weight, bias, tile_v=256)
    out = jax.block_until_ready(out)

    ref = _reference(token_ids, weight, bias)
    assert out.shape == (B, 1)
    assert jnp.allclose(out, ref, atol=1e-5, rtol=1e-5), (out, ref)

    print("KERNEL_OK")
</pallas_src>

<mosaic_0001>
module attributes {stable_mosaic.version = 11 : i64} {
  func.func @_regression_kernel(%arg0: i32, %arg1: i32, %arg2: memref<4x8xi32, #tpu.memory_space<vmem>>, %arg3: memref<1x256xf32, #tpu.memory_space<vmem>>, %arg4: memref<1xf32, #tpu.memory_space<smem>>, %arg5: memref<1x4xf32, #tpu.memory_space<vmem>>, %arg6: memref<1x4xf32, #tpu.memory_space<vmem>>) attributes {dimension_semantics = [#tpu.dimension_semantics<parallel>, #tpu.dimension_semantics<arbitrary>], iteration_bounds = array<i64: 1, 4>, scalar_prefetch = 0 : i64, scratch_operands = 1 : i64, tpu.core_type = #tpu.core_type<tc>, window_params = [{transform_indices = @transform_0, window_bounds = array<i64: 4, 8>}, {transform_indices = @transform_1, window_bounds = array<i64: 1, 256>}, {transform_indices = @transform_2, window_bounds = array<i64: 1>}, {transform_indices = @transform_3, window_bounds = array<i64: 1, 4>}]} {
    %c0_i32 = arith.constant 0 : i32
    %0 = arith.cmpi eq, %arg1, %c0_i32 : i32
    %1 = arith.extui %0 : i1 to i32
    %c0_i32_0 = arith.constant 0 : i32
    %2 = arith.cmpi ne, %1, %c0_i32_0 : i32
    scf.if %2 {
      %cst_9 = arith.constant 0.000000e+00 : f32
      %51 = vector.broadcast %cst_9 : f32 to vector<1x4xf32>
      %c0_10 = arith.constant 0 : index
      %c0_11 = arith.constant 0 : index
      %52 = vector.load %arg6[%c0_10, %c0_11] : memref<1x4xf32, #tpu.memory_space<vmem>>, vector<1x4xf32>
      tpu.vector_store %arg6[%c0_10, %c0_11], %51 {strides = array<i32>} : memref<1x4xf32, #tpu.memory_space<vmem>>, vector<1x4xf32>,
    } else {
    }
    %c0 = arith.constant 0 : index
    %c0_1 = arith.constant 0 : index
    %3 = vector.load %arg2[%c0, %c0_1] : memref<4x8xi32, #tpu.memory_space<vmem>>, vector<4x8xi32>
    %4 = tpu.iota {dimensions = array<i32: 1>} : vector<4x256xi32>
    %c256_i32 = arith.constant 256 : i32
    %5 = arith.muli %arg1, %c256_i32 : i32
    %6 = vector.broadcast %5 : i32 to vector<4x256xi32>
    %7 = arith.addi %4, %6 : vector<4x256xi32>
    %false = arith.constant false
    %8 = vector.broadcast %false : i1 to vector<4x256xi1>
    %9 = vector.extract_strided_slice %3 {offsets = [0, 0], sizes = [4, 1], strides = [1, 1]} : vector<4x8xi32> to vector<4x1xi32>
    %10 = vector.broadcast %9 : vector<4x1xi32> to vector<4x256xi32>
    %11 = arith.cmpi eq, %10, %7 : vector<4x256xi32>
    %12 = arith.ori %8, %11 : vector<4x256xi1>
    %13 = vector.extract_strided_slice %3 {offsets = [0, 1], sizes = [4, 1], strides = [1, 1]} : vector<4x8xi32> to vector<4x1xi32>
    %14 = vector.broadcast %13 : vector<4x1xi32> to vector<4x256xi32>
    %15 = arith.cmpi eq, %14, %7 : vector<4x256xi32>
    %16 = arith.ori %12, %15 : vector<4x256xi1>
    %17 = vector.extract_strided_slice %3 {offsets = [0, 2], sizes = [4, 1], strides = [1, 1]} : vector<4x8xi32> to vector<4x1xi32>
    %18 = vector.broadcast %17 : vector<4x1xi32> to vector<4x256xi32>
    %19 = arith.cmpi eq, %18, %7 : vector<4x256xi32>
    %20 = arith.ori %16, %19 : vector<4x256xi1>
    %21 = vector.extract_strided_slice %3 {offsets = [0, 3], sizes = [4, 1], strides = [1, 1]} : vector<4x8xi32> to vector<4x1xi32>
    %22 = vector.broadcast %21 : vector<4x1xi32> to vector<4x256xi32>
    %23 = arith.cmpi eq, %22, %7 : vector<4x256xi32>
    %24 = arith.ori %20, %23 : vector<4x256xi1>
    %25 = vector.extract_strided_slice %3 {offsets = [0, 4], sizes = [4, 1], strides = [1, 1]} : vector<4x8xi32> to vector<4x1xi32>
    %26 = vector.broadcast %25 : vector<4x1xi32> to vector<4x256xi32>
    %27 = arith.cmpi eq, %26, %7 : vector<4x256xi32>
    %28 = arith.ori %24, %27 : vector<4x256xi1>
    %29 = vector.extract_strided_slice %3 {offsets = [0, 5], sizes = [4, 1], strides = [1, 1]} : vector<4x8xi32> to vector<4x1xi32>
    %30 = vector.broadcast %29 : vector<4x1xi32> to vector<4x256xi32>
    %31 = arith.cmpi eq, %30, %7 : vector<4x256xi32>
    %32 = arith.ori %28, %31 : vector<4x256xi1>
    %33 = vector.extract_strided_slice %3 {offsets = [0, 6], sizes = [4, 1], strides = [1, 1]} : vector<4x8xi32> to vector<4x1xi32>
    %34 = vector.broadcast %33 : vector<4x1xi32> to vector<4x256xi32>
    %35 = arith.cmpi eq, %34, %7 : vector<4x256xi32>
    %36 = arith.ori %32, %35 : vector<4x256xi1>
    %37 = vector.extract_strided_slice %3 {offsets = [0, 7], sizes = [4, 1], strides = [1, 1]} : vector<4x8xi32> to vector<4x1xi32>
    %38 = vector.broadcast %37 : vector<4x1xi32> to vector<4x256xi32>
    %39 = arith.cmpi eq, %38, %7 : vector<4x256xi32>
    %40 = arith.ori %36, %39 : vector<4x256xi1>
    %41 = arith.extui %40 : vector<4x256xi1> to vector<4x256xi32>
    %42 = arith.sitofp %41 : vector<4x256xi32> to vector<4x256xf32>
    %c0_2 = arith.constant 0 : index
    %c0_3 = arith.constant 0 : index
    %43 = vector.load %arg6[%c0_2, %c0_3] : memref<1x4xf32, #tpu.memory_space<vmem>>, vector<1x4xf32>
    %c0_4 = arith.constant 0 : index
    %c0_5 = arith.constant 0 : index
    %44 = vector.load %arg3[%c0_4, %c0_5] : memref<1x256xf32, #tpu.memory_space<vmem>>, vector<1x256xf32>
    %cst = arith.constant dense<0.000000e+00> : vector<1x4xf32>
    %45 = tpu.matmul %44, %42, %cst {dimension_numbers = #tpu.dot_dimension_numbers<[1], [1], [0], [0], [0, 0, 1, 0], [], []>} : vector<1x256xf32>, vector<4x256xf32>, vector<1x4xf32> -> vector<1x4xf32>
    %46 = arith.addf %43, %45 : vector<1x4xf32>
    %c0_6 = arith.constant 0 : index
    %c0_7 = arith.constant 0 : index
    %47 = vector.load %arg6[%c0_6, %c0_7] : memref<1x4xf32, #tpu.memory_space<vmem>>, vector<1x4xf32>
    tpu.vector_store %arg6[%c0_6, %c0_7], %46 {strides = array<i32>} : memref<1x4xf32, #tpu.memory_space<vmem>>, vector<1x4xf32>,
    %c3_i32 = arith.constant 3 : i32
    %48 = arith.cmpi eq, %arg1, %c3_i32 : i32
    %49 = arith.extui %48 : i1 to i32
    %c0_i32_8 = arith.constant 0 : i32
    %50 = arith.cmpi ne, %49, %c0_i32_8 : i32
    scf.if %50 {
      %c0_9 = arith.constant 0 : index
      %c0_10 = arith.constant 0 : index
      %51 = vector.load %arg6[%c0_9, %c0_10] : memref<1x4xf32, #tpu.memory_space<vmem>>, vector<1x4xf32>
      %c0_11 = arith.constant 0 : index
      %52 = memref.load %arg4[%c0_11] : memref<1xf32, #tpu.memory_space<smem>>
      %53 = vector.broadcast %52 : f32 to vector<1x4xf32>
      %54 = arith.addf %51, %53 : vector<1x4xf32>
      %cst_12 = arith.constant 0.000000e+00 : f32
      %55 = vector.broadcast %cst_12 : f32 to vector<1x4xf32>
      %56 = arith.subf %55, %54 : vector<1x4xf32>
      %57 = math.exp %56 : vector<1x4xf32>
      %cst_13 = arith.constant 1.000000e+00 : f32
      %58 = vector.broadcast %cst_13 : f32 to vector<1x4xf32>
      %59 = arith.addf %58, %57 : vector<1x4xf32>
      %cst_14 = arith.constant 1.000000e+00 : f32
      %60 = vector.broadcast %cst_14 : f32 to vector<1x4xf32>
      %61 = arith.divf %60, %59 : vector<1x4xf32>
      %c0_15 = arith.constant 0 : index
      %c0_16 = arith.constant 0 : index
      %62 = vector.load %arg5[%c0_15, %c0_16] : memref<1x4xf32, #tpu.memory_space<vmem>>, vector<1x4xf32>
      tpu.vector_store %arg5[%c0_15, %c0_16], %61 {strides = array<i32>} : memref<1x4xf32, #tpu.memory_space<vmem>>, vector<1x4xf32>,
    } else {
    }
    return
  }
  func.func @transform_0(%arg0: i32, %arg1: i32) -> (i32, i32) {
    %c0_i32 = arith.constant 0 : i32
    %c0_i32_0 = arith.constant 0 : i32
    return %arg0, %c0_i32 : i32, i32
  }
  func.func @transform_1(%arg0: i32, %arg1: i32) -> (i32, i32) {
    %c0_i32 = arith.constant 0 : i32
    %c0_i32_0 = arith.constant 0 : i32
    return %c0_i32, %arg1 : i32, i32
  }
  func.func @transform_2(%arg0: i32, %arg1: i32) -> i32 {
    %c0_i32 = arith.constant 0 : i32
    %c0_i32_0 = arith.constant 0 : i32
    return %c0_i32 : i32
  }
  func.func @transform_3(%arg0: i32, %arg1: i32) -> (i32, i32) {
    %c0_i32 = arith.constant 0 : i32
    %c0_i32_0 = arith.constant 0 : i32
    return %c0_i32, %arg0 : i32, i32
  }
}

</mosaic_0001>

<bundles_post_ra>
// kernel: tpu_custom_call.1
= control target key start
LH: loop header
LB: loop body
LE: loop exit
PB: predicated region body
PF: predicated region fallthrough
CT: control target
= control target key end

     0   :  { %s965_s0 = inlined_call_operand.hbm [shape: s32[4,8], index: 0, kind: input, shape index: {}]   ;;  %s966_s1 = inlined_call_operand.hbm [shape: f32[1,1024], index: 1, kind: input, shape index: {}]   ;;  %s967_s2 = inlined_call_operand.<no memory space> [shape: f32[1], index: 2, kind: input, shape index: {}]   ;;  %s968_s3 = inlined_call_operand.hbm [shape: f32[1,4], index: 3, kind: output, shape index: {}]  }
   0x1   :  { %8 = sst [smem:[#allocation3]] %s967_s2 }
   0x2   :  { %9 = vsyncpa [#allocation5], 0 }
   0x3   :  { %10 = vsyncpa [#allocation8], 0 }
   0x4   :  { %12 = vsyncpa [#allocation8 + $0x1], 0 }
   0x5   :  { %13 = vsyncpa [#allocation6], 0  ;;  %s767_s14 = smov 0   ;;  %s769_s15 = smov 0  }
   0x6   :  { %s771_s16 = smov 0   ;;  %s773_s17 = smov 0  }
   0x7   :  { %s775_s18 = smov 0   ;;  %s777_s19 = smov 0  }
   0x8 LB: > { %s471_s2 = sadd.s32 4294967295, %s729_s19   ;;  %p77_p0 = scmp.ne.s32.totalorder %s713_s15, %s709_s14  ;;  %s729_s19 = sphi %s777_s19, %s19_s19   ;;  %s725_s18 = sphi %s775_s18, %s988_s18   ;;  %s721_s17 = sphi %s773_s17, %s987_s17   ;;  %s717_s16 = sphi %s771_s16, %s986_s16   ;;  %s713_s15 = sphi %s769_s15, %s985_s15   ;;  %s709_s14 = sphi %s767_s14, %s984_s14  }
   0x9   : > { %p799_p1 = scmp.eq.s32.totalorder %s471_s2, 0  ;;  %p472_p2 = scmp.ge.s32.totalorder %s729_s19, 1 }
   0xa   : > { %p135_p3 = scmp.lt.s32.totalorder %s729_s19, 5  ;;  %s731_s23 = smov [#allocation4]  }
   0xb   : > { %s973_s20 = scalar_select %p799_p1, 1, 0 }
   0xc   : > { %p807_p4 = por %p799_p1, %p77_p0  ;;  %p811_p5 = pnand %p472_p2, %p135_p3 }
   0xd   : > { %s150_s24 = sshll.u32 %s731_s23, 4  ;;  %s28_s26 = sadd.s32 1, %s725_s18  ;;  %s151_s24 = int_to_ptr.vmem [resolvable:$true] %s150_s24 }
   0xe   : > { %s974_s21 = scalar_select %p807_p4, 1, 0 }
   0xf   : > { %s975_s22 = scalar_select %p811_p5, 1, 0 }
  0x10   : > { %p501_p6 = pneg %p811_p5  ;;  %s64_s27 = sadd.s32 1, %s717_s16 }
  0x11   : > { %p825_p8 = scmp.ge.s32.totalorder %s28_s26, 4  ;;  %s587_s4 = scalar_lea.hbm %s965_s0, 64 }
  0x12   : > { %p819_p7 = pnand %p501_p6, %p799_p1  ;;  %p588_p9 = scmp.ne.s32.totalorder %s965_s0, %s587_s4 }
  0x13   : > { %s977_s28 = scalar_select %p825_p8, 1, 0 }
  0x14   : > { %p589_p10 = pneg %p819_p7  ;;  %p594_p13 = scmp.lt.u32.totalorder %s587_s4, %s965_s0 }
  0x16   : > { %p590_p11 = pnand %p589_p10, %p588_p9 }
  0x18   : > { %p591_p12 = pneg %p590_p11 }
  0x1a   : > { %p596_p0 = pnand %p594_p13, %p591_p12 }
  0x1c   : > { %599 = shalt.err (!%p596_p0)
}
  0x1d   : > { %s600_s9 = scalar_lea.vmem %s151_s24, 64  ;;  %p608_p4 = scmp.lt.s32.totalorder %s151_s24, %s151_s24 }
  0x1e   : > { %p601_p2 = scmp.ne.s32.totalorder %s151_s24, %s600_s9  ;;  %p609_p1 = scmp.lt.s32.totalorder %s600_s9, %s600_s9 }
  0x20   : > { %p603_p3 = pnand %p601_p2, %p589_p10  ;;  %p610_p5 = por %p609_p1, %p608_p4 }
  0x22   : > { %p604_p6 = pneg %p603_p3 }
  0x24   : > { %p611_p8 = pnand %p610_p5, %p604_p6 }
  0x26   : > { %614 = shalt.err (!%p611_p8)
}
  0x27   : > { %504 = dma.hbm_to_vmem [thread:$0]  (!%p819_p7), %s965_s0, 64, %s151_s24, [#allocation5]  }
  0x28   : > { %p978_p9 = scmp.ne.s32.totalorder %s977_s28, 0  ;;  %p71_p1 = scmp.ne.s32.totalorder %s717_s16, %s713_s15 }
  0x29   : > { %p72_p4 = scmp.eq.s32.totalorder %s729_s19, 0  ;;  %p510_p5 = scmp.lt.s32.totalorder %s729_s19, 4 }
  0x2a   : > { %s990_s26 = smov (%p978_p9, %s28_s26), 0  ;;  %s164_s13 = sand.u32 1, %s717_s16  }
  0x2b   : > { %s61_s12 = ssub.s32 %s725_s18, %s990_s26  ;;  %p73_p10 = por %p72_p4, %p71_p1 }
  0x2c   : > { %p62_p8 = scmp.eq.s32.totalorder %s61_s12, 0  ;;  %s490_s14 = sshll.u32 %s725_s18, 5 }
  0x2d   : > { %s475_s25 = sshll.u32 %s164_s13, 1  ;;  %s865_s24 = scalar_lea.hbm %s966_s1, %s490_s14 }
  0x2e   : > { %s860_s23 = scalar_select %p62_p8, %s717_s16, %s64_s27  }
  0x2f   : > { %s168_s28 = scalar_lea.vmem [#allocation7], %s475_s25  ;;  %p867_p7 = pnand %p510_p5, %p73_p10 }
  0x30   : > { %s176_s4 = sshll.u32 %s168_s28, 4  ;;  %s165_s27 = scalar_lea.sflag [#allocation8], %s164_s13  ;;  %s871_s4 = int_to_ptr.vmem [resolvable:$true] %s176_s4 }
  0x31   : > { %s615_s6 = scalar_lea.hbm %s865_s24, 32  ;;  %p617_p12 = pneg %p867_p7 }
  0x32   : > { %p616_p11 = scmp.ne.s32.totalorder %s865_s24, %s615_s6  ;;  %s620_s9 = scalar_lea.hbm %s966_s1, 128 }
  0x33   : > { %p621_p2 = scmp.lt.u32.totalorder %s865_s24, %s966_s1  ;;  %p622_p3 = scmp.lt.u32.totalorder %s620_s9, %s615_s6 }
  0x34   : > { %p618_p13 = pnand %p617_p12, %p616_p11  ;;  %p624_p9 = scmp.lt.u32.totalorder %s615_s6, %s865_s24 }
  0x35   : > { %p623_p6 = por %p622_p3, %p621_p2 }
  0x36   : > { %p619_p0 = pneg %p618_p13 }
  0x37   : > { %p625_p1 = por %p624_p9, %p623_p6 }
  0x39   : > { %p626_p4 = pnand %p625_p1, %p619_p0 }
  0x3b   : > { %629 = shalt.err (!%p626_p4)
}
  0x3c   : > { %s630_s12 = scalar_lea.vmem %s871_s4, 32  ;;  %s732_s13 = smov [#allocation7]  }
  0x3d   : > { %p631_p5 = scmp.ne.s32.totalorder %s871_s4, %s630_s12  ;;  %s635_s14 = sshll.u32 %s732_s13, 4  ;;  %s636_s14 = int_to_ptr.vmem [resolvable:$false] %s635_s14 }
  0x3e   : > { %s637_s25 = scalar_lea.vmem %s636_s14, 64  ;;  %p638_p11 = scmp.lt.s32.totalorder %s871_s4, %s636_s14 }
  0x3f   : > { %p633_p8 = pnand %p631_p5, %p617_p12  ;;  %p639_p13 = scmp.lt.s32.totalorder %s637_s25, %s630_s12 }
  0x41   : > { %p634_p10 = pneg %p633_p8  ;;  %p640_p2 = por %p639_p13, %p638_p11 }
  0x43   : > { %p641_p3 = pnand %p640_p2, %p634_p10 }
  0x45   : > { %644 = shalt.err (!%p641_p3)
}
  0x46   : > { %508 = dma.hbm_to_vmem [thread:$0]  (!%p867_p7), %s865_s24, 32, %s871_s4, %s165_s27  }
  0x47   : > { %p980_p0 = scmp.ne.s32.totalorder %s975_s22, 0 }
  0x48   : > { %p981_p12 = scmp.ne.s32.totalorder (!%p980_p0), %s973_s20, 0 }
  0x49   : > { %185 = sbr.rel (%p980_p0) target bundleno = 529 (0x211), region = 32 }
  0x50   : > { %696 = dma.done.wait (%p981_p12), [#allocation5], 64  }
  0x51   : > { %698 = vsyncadd (%p981_p12), [#allocation5], 4294967232  ;;  %s191_s29 = sand.u32 1, %s713_s15   ;;  %p982_p6 = scmp.ne.s32.totalorder %s974_s21, 0 }
  0x52   : > { %s905_s30 = sshll.u32 %s191_s29, 1  ;;  %s192_s28 = scalar_lea.sflag [#allocation8], %s191_s29 }
  0x53   : > { %s195_s5 = scalar_lea.vmem [#allocation7], %s905_s30 }
  0x54   : > { %700 = dma.done.wait (%p982_p6), %s192_s28, 32  }
  0x55   : > { %702 = vsyncadd (%p982_p6), %s192_s28, 4294967264  ;;  %p481_p7 = scmp.ne.s32.totalorder %s721_s17, 0 }
  0x56   : > { %vm218_vm0 = vcmask (!%p481_p7), 24576   ;;  %v733_v0 = vmov (!%p481_p7), 0.0  }
  0x57   : > { %217 = sbr.rel (%p481_p7) target bundleno = 94 (0x5e), region = 44  ;;  %219 = vst.msk [vmem:[#allocation2] sm:$0x1] (!%p481_p7), %vm218_vm0, %v733_v0 }
  0x5e PF: > { %v220_v1 = vld [vmem:[#allocation4] sm:$0xf]  ;;  %v734_v2 = vmov 2   ;;  %v735_v3 = vmov 0   ;;  %v736_v4 = vmov 3   ;;  %v737_v5 = vmov 1  }
  0x5f   : > { %576 = vset.pattern.permute.xlu1 %v734_v2  ;;  %574 = vset.pattern.permute.xlu0 %v735_v3  ;;  %v738_v6 = vmov 4   ;;  %v739_v7 = vmov 5   ;;  %v740_v8 = vmov 6   ;;  %v741_v9 = vmov 7   ;;  %v287_v12 = vld [vmem:[%s195_s5] sm:$0x3] }
  0x60   : > { %241 = vperm.xlu1 %576, %v220_v1   ;;  %229 = vperm.xlu0 %574, %v220_v1   ;;  %v221_v10 = vlaneseq  ;;  %s482_s20 = sshll.u32 %s721_s17, 8  ;;  %v742_v30 = vmov 0.0   ;;  %v286_v33 = vld [vmem:[#allocation2] sm:$0x1]  ;;  %p485_p9 = scmp.ne.s32.totalorder %s721_s17, 3 }
  0x61   : > { %v225_v19 = vstv %s482_s20  ;;  %s377_s21 = sld [smem:[#allocation3]] (!%p485_p9) }
  0x62   : > { %v290_v11 = vshrl.u32 %v221_v10, 7  ;;  %v222_v17 = vand.u32 127, %v221_v10 }
  0x64   : > { %577 = vset.pattern.permute.xlu1 %v736_v4  ;;  %575 = vset.pattern.permute.xlu0 %v737_v5  ;;  %v291_v13 = vsub.s32 0, %v290_v11  ;;  %v295_v14 = vsub.s32 1, %v290_v11  ;;  %v223_v18 = vadd.s32 128, %v222_v17  ;;  %v226_v22 = vadd.s32 %v225_v19, %v222_v17 }
  0x65   : > { %248 = vperm.xlu1 %577, %v220_v1   ;;  %234 = vperm.xlu0 %575, %v220_v1  }
  0x66   : > { %v292_v15 = vrot.slane %v287_v12, %v291_v13  ;;  %v296_v16 = vrot.slane %v287_v12, %v295_v14  ;;  %v227_v23 = vadd.s32 %v225_v19, %v223_v18 }
  0x67   : > { %v378_v38 = vstv (!%p485_p9), %s377_s21 }
  0x68   : > { %363 = vmatprep.mubr.f32.mxu0 %v296_v16 }
  0x69   : > { %578 = vset.pattern.permute.xlu1 %v738_v6  ;;  %579 = vset.pattern.permute.xlu0 %v739_v7 }
  0x6a   : > { %255 = vperm.xlu1 %578, %v220_v1   ;;  %262 = vperm.xlu0 %579, %v220_v1  }
  0x6e   : > { %580 = vset.pattern.permute.xlu1 %v740_v8  ;;  %582 = vset.pattern.permute.xlu0 %v741_v9 }
  0x6f   : > { %269 = vperm.xlu1 %580, %v220_v1  }
  0x73   : > { %581 = vset.pattern.permute.xlu1 %v741_v9 }
  0x74   : > { %276 = vperm.xlu1 %581, %v220_v1  }
  0xdf   : > { %v242_v20 = vpop.permute.xlu1 %241  ;;  %v230_v21 = vpop.permute.xlu0 %229 }
  0xe0   : > { %vm231_vm1 = vcmp.eq.s32.totalorder %v230_v21, %v226_v22  ;;  %vm232_vm2 = vcmp.eq.s32.totalorder %v230_v21, %v227_v23  ;;  %vm243_vm7 = vcmp.eq.s32.totalorder %v242_v20, %v226_v22  ;;  %vm244_vm8 = vcmp.eq.s32.totalorder %v242_v20, %v227_v23 }
  0xe4   : > { %v249_v24 = vpop.permute.xlu1 %248  ;;  %v235_v25 = vpop.permute.xlu0 %234 }
  0xe5   : > { %vm236_vm3 = vcmp.eq.s32.totalorder %v235_v25, %v226_v22  ;;  %vm237_vm4 = vcmp.eq.s32.totalorder %v235_v25, %v227_v23  ;;  %vm250_vm11 = vcmp.eq.s32.totalorder %v249_v24, %v226_v22  ;;  %vm251_vm13 = vcmp.eq.s32.totalorder %v249_v24, %v227_v23 }
  0xe6   : > { %vm238_vm5 = vmor %vm231_vm1, %vm236_vm3 }
  0xe7   : > { %vm239_vm6 = vmor %vm232_vm2, %vm237_vm4 }
  0xe8   : > { %vm245_vm9 = vmor %vm238_vm5, %vm243_vm7 }
  0xe9   : > { %v256_v26 = vpop.permute.xlu1 %255  ;;  %vm246_vm10 = vmor %vm239_vm6, %vm244_vm8  ;;  %v263_v27 = vpop.permute.xlu0 %262 }
  0xea   : > { %vm257_vm12 = vcmp.eq.s32.totalorder %v256_v26, %v226_v22  ;;  %vm258_vm14 = vcmp.eq.s32.totalorder %v256_v26, %v227_v23  ;;  %vm252_vm15 = vmor %vm245_vm9, %vm250_vm11  ;;  %vm264_vm3 = vcmp.eq.s32.totalorder %v263_v27, %v226_v22  ;;  %vm265_vm4 = vcmp.eq.s32.totalorder %v263_v27, %v227_v23 }
  0xeb   : > { %vm253_vm0 = vmor %vm246_vm10, %vm251_vm13 }
  0xec   : > { %vm259_vm1 = vmor %vm252_vm15, %vm257_vm12 }
  0xed   : > { %vm260_vm2 = vmor %vm253_vm0, %vm258_vm14  ;;  %vm370_vm14 = vcmask 24576  }
  0xee   : > { %v270_v28 = vpop.permute.xlu1 %269  ;;  %vm266_vm7 = vmor %vm259_vm1, %vm264_vm3 }
  0xef   : > { %vm272_vm5 = vcmp.eq.s32.totalorder %v270_v28, %v227_v23  ;;  %vm271_vm6 = vcmp.eq.s32.totalorder %v270_v28, %v226_v22  ;;  %vm267_vm8 = vmor %vm260_vm2, %vm265_vm4 }
  0xf0   : > { %vm274_vm9 = vmor %vm267_vm8, %vm272_vm5 }
  0xf1   : > { %vm273_vm13 = vmor %vm266_vm7, %vm271_vm6 }
  0xf3   : > { %v277_v29 = vpop.permute.xlu1 %276 }
  0xf4   : > { %vm278_vm11 = vcmp.eq.s32.totalorder %v277_v29, %v226_v22  ;;  %vm279_vm10 = vcmp.eq.s32.totalorder %v277_v29, %v227_v23 }
  0xf5   : > { %vm281_vm12 = vmor %vm274_vm9, %vm279_vm10 }
  0xf6   : > { %v484_v31 = vsel %vm281_vm12, 1.0, %v742_v30  ;;  %vm280_vm15 = vmor %vm273_vm13, %vm278_vm11 }
  0xf7   : > { %299 = vmatprep.subr.mxu0 %v484_v31  ;;  %v483_v32 = vsel %vm280_vm15, 1.0, %v742_v30 }
  0xf8   : > { %300 = vmatpush1.xpose.msra.mxu0 %v483_v32 }
  0xfb   : > { %364 = vmatmul.mubr.f32.vlgmr.msra.gmra.mrb[0].mxu0 %v292_v15 }
 0x1cb   : > { %375 = sbr.rel (%p485_p9) target bundleno = 504 (0x1f8), region = 48 }
 0x1ce   : > { %v365_v34 = vpop.f32.mrb[0].mxu0 }
 0x1cf   : > { %v369_v35 = vadd.f32 %v365_v34, %v286_v33  ;;  %v367_v36 = vpop.f32.mrb[1].mxu0 }
 0x1d1   : > { %371 = vst.msk [vmem:[#allocation2] sm:$0x1] %vm370_vm14, %v369_v35 }
 0x1d8   : > { %v376_v37 = vld [vmem:[#allocation2] sm:$0x1] }
 0x1d9   : > { %v379_v39 = vadd.f32 %v378_v38, %v376_v37 }
 0x1db   : > { %v380_v40 = vsub.f32 0.0, %v379_v39 }
 0x1dd   : > { %v381_v41 = vmul.f32 1.442695, %v380_v40 }
 0x1df   : > { %583 = vpow2.f32 %v381_v41 }
 0x1e9   : > { %v584_v42 = vpop.eup %583 }
 0x1ea   : > { %v383_v43 = vadd.f32 1.0, %v584_v42 }
 0x1ec   : > { %585 = vrcp.f32 %v383_v43 }
 0x1f6   : > { %v586_v44 = vpop.eup %585 }
 0x1f7   : > { %386 = vst.msk [vmem:[#allocation9] sm:$0x1] %vm370_vm14, %v586_v44 }
 0x1f8 PF: > { %p921_p1 = scmp.eq.s32.totalorder %s471_s2, 3  ;;  %s743_s17 = smov [#allocation9]  }
 0x1f9   : > { %s396_s24 = sshll.u32 %s743_s17, 4  ;;  %s397_s24 = int_to_ptr.vmem [resolvable:$true] %s396_s24 }
 0x1fa   : > { %s645_s4 = scalar_lea.vmem %s397_s24, 16  ;;  %s651_s27 = scalar_lea.vmem %s397_s24, 32 }
 0x1fb   : > { %p646_p4 = scmp.ne.s32.totalorder %s397_s24, %s645_s4  ;;  %p652_p10 = scmp.lt.s32.totalorder %s397_s24, %s397_s24 }
 0x1fc   : > { %p653_p11 = scmp.lt.s32.totalorder %s651_s27, %s645_s4 }
 0x1fd   : > { %p647_p5 = pnand %p646_p4, %p921_p1 }
 0x1fe   : > { %p654_p13 = por %p653_p11, %p652_p10 }
 0x1ff   : > { %p648_p8 = pneg %p647_p5 }
 0x201   : > { %p655_p2 = pnand %p654_p13, %p648_p8 }
 0x203   : > { %658 = shalt.err (!%p655_p2)
}
 0x204   : > { %s659_s7 = scalar_lea.hbm %s968_s3, 16 }
 0x205   : > { %p660_p3 = scmp.ne.s32.totalorder %s968_s3, %s659_s7  ;;  %p665_p6 = scmp.lt.u32.totalorder %s659_s7, %s968_s3 }
 0x207   : > { %p661_p0 = pnand %p660_p3, %p921_p1 }
 0x209   : > { %p662_p12 = pneg %p661_p0 }
 0x20b   : > { %p667_p7 = pnand %p665_p6, %p662_p12 }
 0x20d   : > { %670 = shalt.err (!%p667_p7)
}
 0x20e   : > { %498 = dma.vmem_to_hbm [thread:$0]  (%p921_p1), %s397_s24, 16, %s968_s3, [#allocation6]  }
 0x20f   : > { %704 = dma.done.wait (%p921_p1), [#allocation6], 16  }
 0x210   : > { %706 = vsyncadd (%p921_p1), [#allocation6], 4294967280 }
 0x211 PF: > { %s19_s19 = sadd.s32 1, %s729_s19   ;;  %s984_s14 = smov %s713_s15 }
 0x212   : > { %p16_p9 = scmp.ge.s32.totalorder %s19_s19, 6   ;;  %s985_s15 = smov %s717_s16 }
 0x213   : > { %s986_s16 = smov %s860_s23  ;;  %s987_s17 = smov %s725_s18 }
 0x214   : > { %s988_s18 = smov %s990_s26  ;;  %18 = sbr.rel (!%p16_p9) target bundleno = 8 (0x8), region = 84 }
 0x21b   :  { %409 = vsyncpa [#allocation5], 1 }
 0x21c   :  { %411 = vsyncpa [#allocation5 + $0x1], 1 }
 0x21d   :  { %412 = vsyncpa [#allocation8], 1 }
 0x21e   :  { %414 = vsyncpa [#allocation8 + $0x1], 1 }
 0x21f   :  { %415 = vsyncpa [#allocation6], 1 }
 0x220   :  { %417 = vsyncpa [#allocation6 + $0x1], 1 }

</bundles_post_ra>
